<compile_context>
chip_gen: v6e
topology: v6e:2x2x1
jax: 0.10.0
libtpu: 0.0.40
codegen_flags: <defaults>
</compile_context>

<pallas_src>
import functools

import jax
import jax.numpy as jnp
from jax.experimental import pallas as pl
from jax.experimental.pallas import tpu as pltpu

_LANE = 128
_SUBLANE = 8
_TARGET_TILE_BYTES = 1 << 20       # aim for ~1 MiB of streamed activation per tile
_SMALL_TILE_BYTES = 512 * 1024     # below this, deepen the x/out pipeline to 3


def _round_up(n, m):
    return (n + m - 1) // m * m


# ----------------------------------------------------------------------------
# Hardware-aware budgets & capability checks (evaluated once, cached).
# ----------------------------------------------------------------------------
@functools.lru_cache(maxsize=None)
def _vmem_limits():
    """(vmem_limit_bytes, working_budget_bytes), generation-aware."""
    cap = 64 * 1024 * 1024          # conservative default: v7x per-TensorCore VMEM
    try:
        info = pltpu.get_tpu_info()
        cap_q = getattr(info, "vmem_capacity_bytes", None)
        if cap_q:
            cap = int(cap_q)
    except Exception:
        pass
    limit = min(int(cap * 0.85), cap - (8 << 20))   # headroom for Mosaic scratch
    budget = int(limit * 0.85)                      # working set used for tile sizing
    return limit, budget


@functools.lru_cache(maxsize=None)
def _buffered_supported():
    """One-time probe: does this Pallas build accept pipeline_mode=pl.Buffered(n)?"""
    try:
        def k(a_ref, c_ref, o_ref):
            o_ref[...] = a_ref[...] + c_ref[...]

        f = pl.pallas_call(
            k,
            out_shape=jax.ShapeDtypeStruct((32, _LANE), jnp.float32),
            grid_spec=pltpu.PrefetchScalarGridSpec(
                num_scalar_prefetch=0,
                grid=(4,),
                in_specs=[
                    pl.BlockSpec((_SUBLANE, _LANE), lambda i: (i, 0),
                                 pipeline_mode=pl.Buffered(3)),
                    pl.BlockSpec((_SUBLANE, _LANE), lambda i: (0, 0),
                                 pipeline_mode=pl.Buffered(1)),
                ],
                out_specs=pl.BlockSpec((_SUBLANE, _LANE), lambda i: (i, 0)),
            ),
        )
        a = jnp.zeros((32, _LANE), jnp.float32)
        c = jnp.zeros((_SUBLANE, _LANE), jnp.float32)
        jax.jit(f).lower(a, c).compile()
        return True
    except Exception:
        return False


def _pm(n):
    """pipeline_mode kwargs for a BlockSpec (empty if unsupported / unrequested)."""
    if n is None or not _buffered_supported():
        return {}
    return dict(pipeline_mode=pl.Buffered(n))


# ----------------------------------------------------------------------------
# One-time data preparation (keep out of the per-call hot path).
# ----------------------------------------------------------------------------
def prepare_ffn_params(w1, b1, w2, b2):
    """Transpose the Conv1d(k=1) weights (H_out, H_in) -> (H_in, H_out) and
    zero-pad the hidden dim to a multiple of 128 lanes. Biases pre-cast to f32.
    Call once per layer; reuse across forward passes."""
    H = w1.shape[0]
    Hp = _round_up(H, _LANE)
    pad = Hp - H

    def prep_w(w):
        return jnp.pad(w.T, ((0, pad), (0, pad)))

    def prep_b(b):
        return jnp.pad(b.astype(jnp.float32), (0, pad)).reshape(1, Hp)

    return {"w1t": prep_w(w1), "b1": prep_b(b1),
            "w2t": prep_w(w2), "b2": prep_b(b2), "H": H, "Hp": Hp}


def pad_activations(x):
    """(B, L, H) -> lane-padded (M_pad, Hp) slab + metadata.

    Do this ONCE at the boundary of a stack of token-pointwise layers and keep
    activations in this layout between layers: padded hidden columns stay
    exactly zero through the FFN, so the layout is stable under composition and
    the per-layer hot path does no pad/slice copies.
    """
    B, L, H = x.shape
    Hp = _round_up(H, _LANE)
    M = B * L
    M_pad = _round_up(M, _SUBLANE)
    x2d = x.reshape(M, H)
    if M_pad != M or Hp != H:
        x2d = jnp.pad(x2d, ((0, M_pad - M), (0, Hp - H)))
    return x2d, (B, L, H)


def unpad_activations(y2d, meta):
    B, L, H = meta
    return y2d[:B * L, :H].reshape(B, L, H)


# ----------------------------------------------------------------------------
# Kernels.
# ----------------------------------------------------------------------------
def _ffn_resident_kernel(x_ref, w1t_ref, b1_ref, w2t_ref, b2_ref, o_ref):
    """(tm, Hp) token tile; full (Hp, Hp) weights resident in VMEM."""
    x = x_ref[...]                                      # keep input dtype for the MXU
    h = jnp.dot(x, w1t_ref[...], preferred_element_type=jnp.float32)
    h = jnp.maximum(h + b1_ref[...], 0.0)               # bias + ReLU in f32
    # Cast hidden activations to the weight dtype for the second MXU pass
    # (intentional bf16 downcast when the model runs in bf16).
    y = jnp.dot(h.astype(w2t_ref.dtype), w2t_ref[...],
                preferred_element_type=jnp.float32)
    o_ref[...] = (y + b2_ref[...] + x.astype(jnp.float32)).astype(o_ref.dtype)


def _ffn_tiled_kernel(x_ref, w1t_ref, b1_ref, w2t_ref, b2_ref, o_ref, acc_ref):
    """Hidden-dim-tiled variant: grid axis 1 walks tn-wide slices of the FFN's
    inner hidden axis; an f32 VMEM accumulator holds the partial second matmul."""
    j = pl.program_id(1)

    @pl.when(j == 0)
    def _():
        acc_ref[...] = jnp.zeros_like(acc_ref)

    x = x_ref[...]
    h = jnp.dot(x, w1t_ref[...], preferred_element_type=jnp.float32)
    h = jnp.maximum(h + b1_ref[...], 0.0)
    acc_ref[...] += jnp.dot(h.astype(w2t_ref.dtype), w2t_ref[...],
                            preferred_element_type=jnp.float32)

    @pl.when(j == pl.num_programs(1) - 1)
    def _():
        o_ref[...] = (acc_ref[...] + b2_ref[...]
                      + x.astype(jnp.float32)).astype(o_ref.dtype)


# ----------------------------------------------------------------------------
# Tile sizing.
# ----------------------------------------------------------------------------
def _cap_rows(tm, M_pad):
    tm = min(tm, _round_up(M_pad, _SUBLANE))
    # Keep at least two grid steps so the row axis can shard across v7x's two
    # TensorCores (costs ~0.35us extra step overhead elsewhere -- negligible).
    if M_pad >= 2 * _SUBLANE:
        tm = min(tm, _round_up(pl.cdiv(M_pad, 2), _SUBLANE))
    return max(tm, _SUBLANE)


def _choose_tm_resident(M_pad, Hp, io_itemsize, w_itemsize, budget):
    """Row tile for the resident-weight path, or None if weights don't fit."""
    w_copies = 1 if _buffered_supported() else 2       # Buffered(1) => 1x weight VMEM
    weight_bytes = (2 * Hp * Hp * w_itemsize + 2 * Hp * 4) * w_copies
    if weight_bytes > budget * 0.6:
        return None
    # Per-row working set: up to 3 pipeline buffers each for x and out, plus
    # f32 temporaries (h, y) inside the kernel body.
    per_row = 3 * Hp * io_itemsize * 2 + 3 * Hp * 4
    avail = budget - weight_bytes
    tm_cap = max(_SUBLANE, (avail // per_row) // _SUBLANE * _SUBLANE)
    # Bandwidth-aware target: ~1 MiB of streamed activation per tile so the
    # ~0.35us per-grid-step overhead is negligible vs the tile DMA.
    tm = _round_up(max(_SUBLANE, pl.cdiv(_TARGET_TILE_BYTES, Hp * io_itemsize)),
                   _SUBLANE)
    return _cap_rows(min(tm, tm_cap), M_pad)


def _choose_tiles_hidden(M_pad, Hp, io_itemsize, w_itemsize, budget,
                         hidden_tile=None):
    """(tm, tn) for the hidden-dim-tiled path."""
    if hidden_tile is not None:
        assert hidden_tile % _LANE == 0 and 0 < hidden_tile <= Hp
        tn = hidden_tile
    else:
        # W1t[:, j] (Hp, tn) and W2t[j, :] (tn, Hp) are double-buffered; let the
        # streamed weight slabs use at most ~55% of the budget.
        per_tn = 2 * 2 * Hp * w_itemsize
        tn = (int(budget * 0.55) // per_tn) // _LANE * _LANE
        tn = min(tn, Hp)
        if tn < _LANE:
            # TODO(synk): also tile the contraction (K) dim of W1 for extreme Hp.
            raise ValueError(
                "PointWiseFeedForward: hidden dim too large for VMEM even with "
                f"a 128-wide hidden tile (Hp={Hp}).")
    weight_bytes = 2 * 2 * Hp * tn * w_itemsize + 2 * 2 * tn * 4 + 2 * Hp * 4
    # Per-row working set: x + out (double-buffered, io dtype), f32 accumulator,
    # f32 h tile, f32 partial product.
    per_row = 2 * 2 * Hp * io_itemsize + Hp * 4 + tn * 4 + Hp * 4
    avail = max(budget - weight_bytes, per_row * _SUBLANE)
    tm_cap = max(_SUBLANE, (avail // per_row) // _SUBLANE * _SUBLANE)
    tm = _round_up(max(_SUBLANE, pl.cdiv(_TARGET_TILE_BYTES, Hp * io_itemsize)),
                   _SUBLANE)
    return _cap_rows(min(tm, tm_cap), M_pad), tn


# ----------------------------------------------------------------------------
# pallas_call builders.
# ----------------------------------------------------------------------------
def _build_resident_call(M_pad, Hp, tm, io_dtype, w_itemsize, vmem_limit):
    io_itemsize = jnp.dtype(io_dtype).itemsize
    n_i = pl.cdiv(M_pad, tm)
    stream_depth = 3 if (tm * Hp * io_itemsize < _SMALL_TILE_BYTES and n_i >= 3) else None
    cost = pl.CostEstimate(
        flops=4 * M_pad * Hp * Hp,
        transcendentals=0,
        bytes_accessed=(2 * M_pad * Hp * io_itemsize
                        + 2 * Hp * Hp * w_itemsize + 2 * Hp * 4),
    )
    return pl.pallas_call(
        _ffn_resident_kernel,
        out_shape=jax.ShapeDtypeStruct((M_pad, Hp), io_dtype),
        grid_spec=pltpu.PrefetchScalarGridSpec(
            num_scalar_prefetch=0,
            grid=(n_i,),
            in_specs=[
                pl.BlockSpec((tm, Hp), lambda i: (i, 0), **_pm(stream_depth)),  # x
                pl.BlockSpec((Hp, Hp), lambda i: (0, 0), **_pm(1)),             # W1^T
                pl.BlockSpec((1, Hp), lambda i: (0, 0), **_pm(1)),              # b1
                pl.BlockSpec((Hp, Hp), lambda i: (0, 0), **_pm(1)),             # W2^T
                pl.BlockSpec((1, Hp), lambda i: (0, 0), **_pm(1)),              # b2
            ],
            out_specs=pl.BlockSpec((tm, Hp), lambda i: (i, 0), **_pm(stream_depth)),
        ),
        compiler_params=pltpu.CompilerParams(
            dimension_semantics=("parallel",),        # shard rows over v7x's 2 TCs
            vmem_limit_bytes=vmem_limit,
        ),
        cost_estimate=cost,
    )


def _build_tiled_call(M_pad, Hp, tm, tn, io_dtype, w_dtype, vmem_limit):
    io_itemsize = jnp.dtype(io_dtype).itemsize
    w_itemsize = jnp.dtype(w_dtype).itemsize
    n_i, n_j = pl.cdiv(M_pad, tm), pl.cdiv(Hp, tn)
    cost = pl.CostEstimate(
        flops=4 * M_pad * Hp * Hp,
        transcendentals=0,
        bytes_accessed=(2 * M_pad * Hp * io_itemsize
                        + n_i * 2 * Hp * Hp * w_itemsize),
    )
    return pl.pallas_call(
        _ffn_tiled_kernel,
        out_shape=jax.ShapeDtypeStruct((M_pad, Hp), io_dtype),
        grid_spec=pltpu.PrefetchScalarGridSpec(
            num_scalar_prefetch=0,
            grid=(n_i, n_j),
            in_specs=[
                pl.BlockSpec((tm, Hp), lambda i, j: (i, 0)),   # x (re-fetched per i only)
                pl.BlockSpec((Hp, tn), lambda i, j: (0, j)),   # W1^T column slice
                pl.BlockSpec((1, tn), lambda i, j: (0, j)),    # b1 slice
                pl.BlockSpec((tn, Hp), lambda i, j: (j, 0)),   # W2^T row slice
                pl.BlockSpec((1, Hp), lambda i, j: (0, 0), **_pm(1)),  # b2
            ],
            out_specs=pl.BlockSpec((tm, Hp), lambda i, j: (i, 0)),
            scratch_shapes=[pltpu.VMEM((tm, Hp), jnp.float32)],
        ),
        compiler_params=pltpu.CompilerParams(
            dimension_semantics=("parallel", "arbitrary"),
            vmem_limit_bytes=vmem_limit,
        ),
        cost_estimate=cost,
    )


# ----------------------------------------------------------------------------
# Public entry points.
# ----------------------------------------------------------------------------
def pointwise_feedforward(x2d, params, *, force_hidden_tiling=False,
                          hidden_tile=None):
    """Fused FFN on a lane-padded (M_pad, Hp) activation slab (see
    pad_activations). Returns the same layout; no pad/slice copies inside."""
    M_pad, Hp = x2d.shape
    assert Hp == params["Hp"], "activation slab not padded to the prepared Hp"
    io_itemsize = jnp.dtype(x2d.dtype).itemsize
    w_dtype = params["w1t"].dtype
    w_itemsize = jnp.dtype(w_dtype).itemsize
    vmem_limit, budget = _vmem_limits()

    tm = None if force_hidden_tiling else _choose_tm_resident(
        M_pad, Hp, io_itemsize, w_itemsize, budget)

    if tm is not None:
        call = _build_resident_call(M_pad, Hp, tm, x2d.dtype, w_itemsize, vmem_limit)
    else:
        tm, tn = _choose_tiles_hidden(M_pad, Hp, io_itemsize, w_itemsize, budget,
                                      hidden_tile=hidden_tile)
        call = _build_tiled_call(M_pad, Hp, tm, tn, x2d.dtype, w_dtype, vmem_limit)

    return call(x2d, params["w1t"], params["b1"], params["w2t"], params["b2"])


def pointwise_feedforward_bld(x, params, **kwargs):
    """Convenience wrapper taking/returning (B, L, H). For a stack of layers,
    prefer pad_activations once + repeated pointwise_feedforward calls."""
    x2d, meta = pad_activations(x)
    return unpad_activations(pointwise_feedforward(x2d, params, **kwargs), meta)


def reference(x, w1, b1, w2, b2):
    # Pure-JAX reference mirroring the PyTorch forward (eval mode).
    h = jnp.einsum("blh,oh->blo", x, w1) + b1
    h = jnp.maximum(h, 0.0)
    y = jnp.einsum("blh,oh->blo", h, w2) + b2
    return y + x


if __name__ == "__main__":
    key = jax.random.PRNGKey(0)

    def run_case(case_key, B, L, H, **ffn_kwargs):
        kx, k1, k2, k3, k4 = jax.random.split(case_key, 5)
        x = jax.random.normal(kx, (B, L, H), dtype=jnp.float32)
        # Conv1d(H, H, kernel_size=1): weight (H, H, 1) -> (H, H), bias (H,)
        bound = 1.0 / float(H) ** 0.5
        w1 = jax.random.uniform(k1, (H, H), jnp.float32, -bound, bound)
        b1 = jax.random.uniform(k2, (H,), jnp.float32, -bound, bound)
        w2 = jax.random.uniform(k3, (H, H), jnp.float32, -bound, bound)
        b2 = jax.random.uniform(k4, (H,), jnp.float32, -bound, bound)

        params = prepare_ffn_params(w1, b1, w2, b2)   # one-time weight transpose + pad
        x2d, meta = pad_activations(x)                # once per layer stack, not per layer
        out2d = pointwise_feedforward(x2d, params, **ffn_kwargs)
        out = jax.block_until_ready(unpad_activations(out2d, meta))

        ref = reference(x, w1, b1, w2, b2)
        assert out.shape == ref.shape
        assert jnp.allclose(out, ref, atol=1e-4, rtol=1e-4), (
            f"mismatch vs reference (B={B}, L={L}, H={H}, {ffn_kwargs})")

    k_a, k_b = jax.random.split(key)
    # Resident-weight fast path (hidden=32 -> Hp=128, weights stay in VMEM).
    run_case(k_a, B=2, L=8, H=32)
    # Hidden-dim-tiled path (hidden=160 -> Hp=256, tn=128, 2 accumulation steps).
    run_case(k_b, B=2, L=8, H=160, force_hidden_tiling=True, hidden_tile=128)
    print("KERNEL_OK")
</pallas_src>

<mosaic_0001>
module attributes {stable_mosaic.version = 11 : i64} {
  func.func @_ffn_resident_kernel(%arg0: i32, %arg1: memref<8x128xf32, #tpu.memory_space<vmem>>, %arg2: memref<128x128xf32, #tpu.memory_space<vmem>>, %arg3: memref<1x128xf32, #tpu.memory_space<vmem>>, %arg4: memref<128x128xf32, #tpu.memory_space<vmem>>, %arg5: memref<1x128xf32, #tpu.memory_space<vmem>>, %arg6: memref<8x128xf32, #tpu.memory_space<vmem>>) attributes {dimension_semantics = [#tpu.dimension_semantics<parallel>], iteration_bounds = array<i64: 2>, scalar_prefetch = 0 : i64, scratch_operands = 0 : i64, tpu.core_type = #tpu.core_type<tc>, window_params = [{transform_indices = @transform_0, window_bounds = array<i64: 8, 128>}, {pipeline_mode = #tpu.pipeline_mode<synchronous>, transform_indices = @transform_1, window_bounds = array<i64: 128, 128>}, {pipeline_mode = #tpu.pipeline_mode<synchronous>, transform_indices = @transform_2, window_bounds = array<i64: 1, 128>}, {pipeline_mode = #tpu.pipeline_mode<synchronous>, transform_indices = @transform_3, window_bounds = array<i64: 128, 128>}, {pipeline_mode = #tpu.pipeline_mode<synchronous>, transform_indices = @transform_4, window_bounds = array<i64: 1, 128>}, {transform_indices = @transform_5, window_bounds = array<i64: 8, 128>}]} {
    %c0 = arith.constant 0 : index
    %c0_0 = arith.constant 0 : index
    %0 = vector.load %arg1[%c0, %c0_0] : memref<8x128xf32, #tpu.memory_space<vmem>>, vector<8x128xf32>
    %c0_1 = arith.constant 0 : index
    %c0_2 = arith.constant 0 : index
    %1 = vector.load %arg2[%c0_1, %c0_2] : memref<128x128xf32, #tpu.memory_space<vmem>>, vector<128x128xf32>
    %cst = arith.constant dense<0.000000e+00> : vector<8x128xf32>
    %2 = tpu.matmul %0, %1, %cst {dimension_numbers = #tpu.dot_dimension_numbers<[1], [0], [0], [1], [0, 0, 1, 1], [], []>} : vector<8x128xf32>, vector<128x128xf32>, vector<8x128xf32> -> vector<8x128xf32>
    %c0_3 = arith.constant 0 : index
    %c0_4 = arith.constant 0 : index
    %3 = vector.load %arg3[%c0_3, %c0_4] : memref<1x128xf32, #tpu.memory_space<vmem>>, vector<1x128xf32>
    %4 = vector.broadcast %3 : vector<1x128xf32> to vector<8x128xf32>
    %5 = arith.addf %2, %4 : vector<8x128xf32>
    %cst_5 = arith.constant 0.000000e+00 : f32
    %6 = vector.broadcast %cst_5 : f32 to vector<8x128xf32>
    %7 = arith.maximumf %5, %6 : vector<8x128xf32>
    %c0_6 = arith.constant 0 : index
    %c0_7 = arith.constant 0 : index
    %8 = vector.load %arg4[%c0_6, %c0_7] : memref<128x128xf32, #tpu.memory_space<vmem>>, vector<128x128xf32>
    %cst_8 = arith.constant dense<0.000000e+00> : vector<8x128xf32>
    %9 = tpu.matmul %7, %8, %cst_8 {dimension_numbers = #tpu.dot_dimension_numbers<[1], [0], [0], [1], [0, 0, 1, 1], [], []>} : vector<8x128xf32>, vector<128x128xf32>, vector<8x128xf32> -> vector<8x128xf32>
    %c0_9 = arith.constant 0 : index
    %c0_10 = arith.constant 0 : index
    %10 = vector.load %arg5[%c0_9, %c0_10] : memref<1x128xf32, #tpu.memory_space<vmem>>, vector<1x128xf32>
    %11 = vector.broadcast %10 : vector<1x128xf32> to vector<8x128xf32>
    %12 = arith.addf %9, %11 : vector<8x128xf32>
    %13 = arith.addf %12, %0 : vector<8x128xf32>
    %c0_11 = arith.constant 0 : index
    %c0_12 = arith.constant 0 : index
    %14 = vector.load %arg6[%c0_11, %c0_12] : memref<8x128xf32, #tpu.memory_space<vmem>>, vector<8x128xf32>
    tpu.vector_store %arg6[%c0_11, %c0_12], %13 {strides = array<i32>} : memref<8x128xf32, #tpu.memory_space<vmem>>, vector<8x128xf32>,
    return
  }
  func.func @transform_0(%arg0: i32) -> (i32, i32) {
    %c0_i32 = arith.constant 0 : i32
    %c0_i32_0 = arith.constant 0 : i32
    return %arg0, %c0_i32 : i32, i32
  }
  func.func @transform_1(%arg0: i32) -> (i32, i32) {
    %c0_i32 = arith.constant 0 : i32
    %c0_i32_0 = arith.constant 0 : i32
    %c0_i32_1 = arith.constant 0 : i32
    return %c0_i32, %c0_i32_0 : i32, i32
  }
  func.func @transform_2(%arg0: i32) -> (i32, i32) {
    %c0_i32 = arith.constant 0 : i32
    %c0_i32_0 = arith.constant 0 : i32
    %c0_i32_1 = arith.constant 0 : i32
    return %c0_i32, %c0_i32_0 : i32, i32
  }
  func.func @transform_3(%arg0: i32) -> (i32, i32) {
    %c0_i32 = arith.constant 0 : i32
    %c0_i32_0 = arith.constant 0 : i32
    %c0_i32_1 = arith.constant 0 : i32
    return %c0_i32, %c0_i32_0 : i32, i32
  }
  func.func @transform_4(%arg0: i32) -> (i32, i32) {
    %c0_i32 = arith.constant 0 : i32
    %c0_i32_0 = arith.constant 0 : i32
    %c0_i32_1 = arith.constant 0 : i32
    return %c0_i32, %c0_i32_0 : i32, i32
  }
  func.func @transform_5(%arg0: i32) -> (i32, i32) {
    %c0_i32 = arith.constant 0 : i32
    %c0_i32_0 = arith.constant 0 : i32
    return %arg0, %c0_i32 : i32, i32
  }
}

</mosaic_0001>

<bundles_post_ra>
// kernel: tpu_custom_call.1
= control target key start
LH: loop header
LB: loop body
LE: loop exit
PB: predicated region body
PF: predicated region fallthrough
CT: control target
= control target key end

     0   :  { %10 = vsyncpa [#allocation3], 0  ;;  %s1155_s0 = inlined_call_operand.hbm [shape: f32[16,128], index: 0, kind: input, shape index: {}]   ;;  %s1156_s1 = inlined_call_operand.hbm [shape: f32[128,128], index: 1, kind: input, shape index: {}]   ;;  %s1157_s2 = inlined_call_operand.vmem [shape: f32[1,128], index: 2, kind: input, shape index: {}]   ;;  %s1158_s3 = inlined_call_operand.hbm [shape: f32[128,128], index: 3, kind: input, shape index: {}]   ;;  %s1159_s4 = inlined_call_operand.vmem [shape: f32[1,128], index: 4, kind: input, shape index: {}]   ;;  %s1160_s5 = inlined_call_operand.hbm [shape: f32[16,128], index: 5, kind: output, shape index: {}]  }
   0x1   :  { %12 = vsyncpa [#allocation3 + $0x1], 0 }
   0x2   :  { %13 = vsyncpa [#allocation6], 0 }
   0x3   :  { %14 = vsyncpa [#allocation4], 0 }
   0x4   :  { %16 = vsyncpa [#allocation4 + $0x1], 0  ;;  %s943_s18 = smov 0   ;;  %s945_s19 = smov 0  }
   0x5   :  { %s947_s20 = smov 0   ;;  %s949_s21 = smov 0  }
   0x6 LB: > { %s964_s22 = sadd.s32 4294967295, %s903_s21   ;;  %s562_s23 = sadd.s32 4294967294, %s903_s21   ;;  %s903_s21 = sphi %s949_s21, %s1182_s21   ;;  %s899_s20 = sphi %s947_s20, %s1181_s20   ;;  %s895_s19 = sphi %s945_s19, %s1180_s19   ;;  %s891_s18 = sphi %s943_s18, %s1179_s18  }
   0x7   : > { %p42_p0 = scmp.ne.s32.totalorder %s895_s19, %s891_s18  ;;  %p1161_p1 = scmp.eq.s32.totalorder %s964_s22, 0 }
   0x8   : > { %p156_p3 = scmp.eq.s32.totalorder %s562_s23, 1  ;;  %p563_p5 = scmp.ge.s32.totalorder %s903_s21, 1 }
   0x9   : > { %p973_p4 = por %p1161_p1, %p42_p0  ;;  %p163_p7 = scmp.lt.s32.totalorder %s903_s21, 3 }
   0xa   : > { %p978_p6 = por %p156_p3, %p42_p0  ;;  %s905_s27 = smov [#allocation5]  }
   0xb   : > { %s1165_s24 = scalar_select %p973_p4, 1, 0 }
   0xc   : > { %s1166_s25 = scalar_select %p978_p6, 1, 0 }
   0xd   : > { %p983_p8 = pnand %p563_p5, %p163_p7  ;;  %s175_s28 = sshll.u32 %s905_s27, 4  ;;  %s176_s28 = int_to_ptr.vmem [resolvable:$true] %s175_s28 }
   0xe   : > { %s906_s30 = smov [#allocation7]   ;;  %s766_s7 = scalar_lea.vmem %s176_s28, 2048 }
   0xf   : > { %s1167_s26 = scalar_select %p983_p8, 1, 0 }
  0x10   : > { %p696_p9 = pneg %p983_p8  ;;  %s191_s6 = sshll.u32 %s906_s30, 4  ;;  %s192_s6 = int_to_ptr.vmem [resolvable:$true] %s191_s6 }
  0x11   : > { %p767_p13 = scmp.ne.s32.totalorder %s176_s28, %s766_s7  ;;  %p774_p5 = scmp.lt.s32.totalorder %s176_s28, %s176_s28 }
  0x12   : > { %p992_p11 = pnand %p696_p9, %p1161_p1  ;;  %p775_p7 = scmp.lt.s32.totalorder %s766_s7, %s766_s7 }
  0x14   : > { %p757_p12 = pneg %p992_p11  ;;  %p776_p10 = por %p775_p7, %p774_p5 }
  0x16   : > { %p769_p0 = pnand %p767_p13, %p757_p12 }
  0x18   : > { %p770_p3 = pneg %p769_p0 }
  0x1a   : > { %p777_p9 = pnand %p776_p10, %p770_p3 }
  0x1c   : > { %780 = shalt.err (!%p777_p9)
}
  0x1d   : > { %s907_s8 = smov 128   ;;  %s908_s9 = smov 8  }
  0x1e   : > { %699 = dma.hbm_to_vmem [thread:$0]  (!%p992_p11), %s1156_s1, 2048, %s176_s28, [#allocation6], %s907_s8, %s907_s8, %s908_s9  }
  0x1f   : > { %s792_s12 = scalar_lea.vmem %s192_s6, 2048  ;;  %p800_p2 = scmp.lt.s32.totalorder %s192_s6, %s192_s6 }
  0x20   : > { %p793_p1 = scmp.ne.s32.totalorder %s192_s6, %s792_s12  ;;  %p801_p6 = scmp.lt.s32.totalorder %s792_s12, %s792_s12 }
  0x22   : > { %p795_p13 = pnand %p793_p1, %p757_p12  ;;  %p802_p5 = por %p801_p6, %p800_p2 }
  0x24   : > { %p796_p0 = pneg %p795_p13 }
  0x26   : > { %p803_p10 = pnand %p802_p5, %p796_p0 }
  0x28   : > { %806 = shalt.err (!%p803_p10)
}
  0x29   : > { %702 = dma.hbm_to_vmem [thread:$0]  (!%p992_p11), %s1158_s3, 2048, %s192_s6, [#allocation6], %s907_s8, %s907_s8, %s908_s9  }
  0x2a   : > { %s1015_s15 = sadd.s32 1, %s903_s21   ;;  %s29_s16 = sadd.s32 1, %s899_s20 }
  0x2b   : > { %s26_s17 = ssub.s32 %s903_s21, %s1015_s15  ;;  %p36_p1 = scmp.ne.s32.totalorder %s899_s20, %s895_s19 }
  0x2c   : > { %p27_p2 = scmp.eq.s32.totalorder %s26_s17, 0  ;;  %p37_p6 = scmp.eq.s32.totalorder %s903_s21, 0 }
  0x2d   : > { %p1169_p12 = scmp.eq.s32.totalorder %s964_s22, 1  ;;  %p713_p7 = scmp.lt.s32.totalorder %s903_s21, 2 }
  0x2e   : > { %s1031_s27 = scalar_select %p27_p2, %s899_s20, %s29_s16  }
  0x2f   : > { %p1025_p3 = por %p1169_p12, %p36_p1  ;;  %p38_p9 = por %p37_p6, %p36_p1 }
  0x30   : > { %s208_s28 = sand.u32 1, %s899_s20   ;;  %s568_s30 = sshll.u32 %s903_s21, 7 }
  0x31   : > { %s1170_s23 = scalar_select %p1025_p3, 1, 0 }
  0x32   : > { %s567_s29 = sshll.u32 %s208_s28, 3  ;;  %s1038_s8 = scalar_lea.hbm %s1155_s0, %s568_s30 }
  0x33   : > { %s212_s9 = scalar_lea.vmem [#allocation2], %s567_s29  ;;  %p1040_p11 = pnand %p713_p7, %p38_p9 }
  0x34   : > { %s219_s10 = sshll.u32 %s212_s9, 4  ;;  %s209_s12 = scalar_lea.sflag [#allocation3], %s208_s28  ;;  %s220_s10 = int_to_ptr.vmem [resolvable:$true] %s219_s10 }
  0x35   : > { %s807_s13 = scalar_lea.hbm %s1038_s8, 128  ;;  %p809_p0 = pneg %p1040_p11 }
  0x36   : > { %p808_p13 = scmp.ne.s32.totalorder %s1038_s8, %s807_s13  ;;  %s812_s17 = scalar_lea.hbm %s1155_s0, 256 }
  0x37   : > { %p813_p1 = scmp.lt.s32.totalorder %s1038_s8, %s1155_s0  ;;  %p814_p2 = scmp.lt.s32.totalorder %s812_s17, %s807_s13 }
  0x38   : > { %p810_p5 = pnand %p809_p0, %p808_p13 }
  0x39   : > { %p815_p6 = por %p814_p2, %p813_p1 }
  0x3a   : > { %p811_p10 = pneg %p810_p5 }
  0x3c   : > { %p816_p12 = pnand %p815_p6, %p811_p10 }
  0x3e   : > { %819 = shalt.err (!%p816_p12)
}
  0x3f   : > { %s820_s6 = scalar_lea.vmem %s220_s10, 128  ;;  %s909_s28 = smov [#allocation2]  }
  0x40   : > { %p821_p7 = scmp.ne.s32.totalorder %s220_s10, %s820_s6  ;;  %s825_s7 = sshll.u32 %s909_s28, 4  ;;  %s826_s7 = int_to_ptr.vmem [resolvable:$false] %s825_s7 }
  0x41   : > { %s827_s9 = scalar_lea.vmem %s826_s7, 256  ;;  %p828_p13 = scmp.lt.s32.totalorder %s220_s10, %s826_s7 }
  0x42   : > { %p823_p9 = pnand %p821_p7, %p809_p0  ;;  %p829_p5 = scmp.lt.s32.totalorder %s827_s9, %s820_s6 }
  0x44   : > { %p824_p3 = pneg %p823_p9  ;;  %p830_p4 = por %p829_p5, %p828_p13 }
  0x46   : > { %p831_p8 = pnand %p830_p4, %p824_p3 }
  0x48   : > { %834 = shalt.err (!%p831_p8)
}
  0x49   : > { %706 = dma.hbm_to_vmem [thread:$0]  (!%p1040_p11), %s1038_s8, 128, %s220_s10, %s209_s12  }
  0x4a   : > { %p1172_p10 = scmp.ne.s32.totalorder %s1167_s26, 0 }
  0x4b   : > { %s1061_s13 = sand.u32 (!%p1172_p10), 1, %s895_s19   ;;  %p1173_p4 = scmp.ne.s32.totalorder (!%p1172_p10), %s1165_s24, 0 }
  0x4c   : > { %228 = sbr.rel (%p1172_p10) target bundleno = 526 (0x20e), region = 40  ;;  %s570_s14 = sshll.u32 (!%p1172_p10), %s1061_s13, 3 }
  0x4d   : > { %s231_s16 = scalar_lea.sflag (!%p1172_p10), [#allocation3], %s1061_s13  ;;  %s1067_s17 = scalar_lea.vmem (!%p1172_p10), [#allocation2], %s570_s14 }
  0x51   : > { %878 = dma.done.wait (%p1173_p4), %s231_s16, 128  }
  0x52   : > { %880 = vsyncadd (%p1173_p4), %s231_s16, 4294967168  ;;  %p1174_p8 = scmp.eq.s32.totalorder %s964_s22, 0 }
  0x54   : > { %882 = dma.done.wait (%p1174_p8), [#allocation6], 4096   ;;  %p1175_p3 = pmov %p1174_p8 }
  0x55   : > { %v910_v0 = vmov 0.0   ;;  %vm911_vm0 = vmmov 0   ;;  %v285_v1 = vld [vmem:[#allocation5 + $0x78] sm:$0xff]  ;;  %v284_v2 = vld [vmem:[#allocation5 + $0x70] sm:$0xff]  ;;  %v283_v3 = vld [vmem:[#allocation5 + $0x68] sm:$0xff]  ;;  %s577_s11 = sshll.u32 %s964_s22, 7 }
  0x56   : > { %884 = vsyncadd (%p1175_p3), [#allocation6], 4294963200  ;;  %614 = vmatprep.subr.mxu0 %v910_v0  ;;  %646 = vmatprep.mubr.msk.f32.mxu0 %vm911_vm0, %v910_v0  ;;  %v282_v4 = vld [vmem:[#allocation5 + $0x60] sm:$0xff]  ;;  %v379_v5 = vld [vmem:[#allocation7 + $0x78] sm:$0xff]  ;;  %s268_s12 = scalar_lea.vmem [#allocation8], %s570_s14  ;;  %s471_s28 = scalar_lea.hbm %s1160_s5, %s577_s11 }
  0x57   : > { %649 = vmatprep.subr.mxu1 %v910_v0  ;;  %681 = vmatprep.mubr.msk.f32.mxu1 %vm911_vm0, %v910_v0  ;;  %v281_v6 = vld [vmem:[#allocation5 + $0x58] sm:$0xff]  ;;  %v378_v7 = vld [vmem:[#allocation7 + $0x70] sm:$0xff]  ;;  %v377_v8 = vld [vmem:[#allocation7 + $0x68] sm:$0xff]  ;;  %s473_s30 = sshll.u32 %s268_s12, 4  ;;  %s460_s7 = scalar_lea.sflag [#allocation4], %s1061_s13  ;;  %s474_s30 = int_to_ptr.vmem [resolvable:$true] %s473_s30 }
  0x58   : > { %615 = vmatpush3.msra.mxu0 %v285_v1  ;;  %650 = vmatpush3.msra.mxu1 %v379_v5  ;;  %v280_v9 = vld [vmem:[#allocation5 + $0x50] sm:$0xff]  ;;  %v376_v10 = vld [vmem:[#allocation7 + $0x60] sm:$0xff]  ;;  %v279_v11 = vld [vmem:[#allocation5 + $0x48] sm:$0xff]  ;;  %s835_s9 = scalar_lea.vmem %s474_s30, 128  ;;  %p1176_p0 = scmp.ne.s32.totalorder %s1170_s23, 0 }
  0x59   : > { %616 = vmatprep.subr.mxu0 %v910_v0  ;;  %651 = vmatprep.subr.mxu1 %v910_v0  ;;  %v375_v12 = vld [vmem:[#allocation7 + $0x58] sm:$0xff]  ;;  %v278_v13 = vld [vmem:[#allocation5 + $0x40] sm:$0xff]  ;;  %v374_v14 = vld [vmem:[#allocation7 + $0x50] sm:$0xff]  ;;  %p836_p11 = scmp.ne.s32.totalorder %s474_s30, %s835_s9  ;;  %s912_s16 = smov [#allocation8]  }
  0x5a   : > { %617 = vmatpush3.msra.mxu0 %v284_v2  ;;  %652 = vmatpush3.msra.mxu1 %v378_v7  ;;  %v277_v15 = vld [vmem:[#allocation5 + $0x38] sm:$0xff]  ;;  %v373_v16 = vld [vmem:[#allocation7 + $0x48] sm:$0xff]  ;;  %v276_v17 = vld [vmem:[#allocation5 + $0x30] sm:$0xff]  ;;  %s839_s22 = sshll.u32 %s912_s16, 4  ;;  %s840_s22 = int_to_ptr.vmem [resolvable:$false] %s839_s22 }
  0x5b   : > { %618 = vmatprep.subr.mxu0 %v910_v0  ;;  %653 = vmatprep.subr.mxu1 %v910_v0  ;;  %v372_v18 = vld [vmem:[#allocation7 + $0x40] sm:$0xff]  ;;  %v275_v19 = vld [vmem:[#allocation5 + $0x28] sm:$0xff]  ;;  %v371_v20 = vld [vmem:[#allocation7 + $0x38] sm:$0xff]  ;;  %p837_p1 = pnand %p836_p11, %p1176_p0  ;;  %s841_s14 = scalar_lea.vmem %s840_s22, 256 }
  0x5c   : > { %619 = vmatpush3.msra.mxu0 %v283_v3  ;;  %654 = vmatpush3.msra.mxu1 %v377_v8  ;;  %v274_v21 = vld [vmem:[#allocation5 + $0x20] sm:$0xff]  ;;  %v370_v22 = vld [vmem:[#allocation7 + $0x30] sm:$0xff]  ;;  %v273_v23 = vld [vmem:[#allocation5 + $0x18] sm:$0xff]  ;;  %p842_p6 = scmp.lt.s32.totalorder %s474_s30, %s840_s22  ;;  %p843_p12 = scmp.lt.s32.totalorder %s841_s14, %s835_s9 }
  0x5d   : > { %620 = vmatprep.subr.mxu0 %v910_v0  ;;  %655 = vmatprep.subr.mxu1 %v910_v0  ;;  %v369_v24 = vld [vmem:[#allocation7 + $0x28] sm:$0xff]  ;;  %v272_v25 = vld [vmem:[#allocation5 + $0x10] sm:$0xff]  ;;  %v368_v26 = vld [vmem:[#allocation7 + $0x20] sm:$0xff]  ;;  %p838_p2 = pneg %p837_p1 }
  0x5e   : > { %621 = vmatpush3.msra.mxu0 %v282_v4  ;;  %656 = vmatpush3.msra.mxu1 %v376_v10  ;;  %v271_v27 = vld [vmem:[#allocation5 + $0x8] sm:$0xff]  ;;  %v367_v28 = vld [vmem:[#allocation7 + $0x18] sm:$0xff]  ;;  %v270_v29 = vld [vmem:[#allocation5] sm:$0xff]  ;;  %p844_p7 = por %p843_p12, %p842_p6 }
  0x5f   : > { %622 = vmatprep.subr.mxu0 %v910_v0  ;;  %657 = vmatprep.subr.mxu1 %v910_v0  ;;  %v269_v30 = vld [vmem:[%s1067_s17] sm:$0xff]  ;;  %v365_v32 = vld [vmem:[#allocation7 + $0x8] sm:$0xff]  ;;  %v364_v33 = vld [vmem:[#allocation7] sm:$0xff] }
  0x60   : > { %623 = vmatpush3.msra.mxu0 %v281_v6  ;;  %658 = vmatpush3.msra.mxu1 %v375_v12  ;;  %v366_v31 = vld [vmem:[#allocation7 + $0x10] sm:$0xff]  ;;  %p845_p9 = pnand %p844_p7, %p838_p2 }
  0x61   : > { %624 = vmatprep.subr.mxu0 %v910_v0  ;;  %659 = vmatprep.subr.mxu1 %v910_v0  ;;  %v574_v34 = vld [vmem:[%s1157_s2] ss:$0 sm:$0xff] }
  0x62   : > { %625 = vmatpush3.msra.mxu0 %v280_v9  ;;  %660 = vmatpush3.msra.mxu1 %v374_v14  ;;  %v575_v39 = vld [vmem:[%s1159_s4] ss:$0 sm:$0xff] }
  0x63   : > { %626 = vmatprep.subr.mxu0 %v910_v0  ;;  %661 = vmatprep.subr.mxu1 %v910_v0 }
  0x64   : > { %627 = vmatpush3.msra.mxu0 %v279_v11  ;;  %662 = vmatpush3.msra.mxu1 %v373_v16 }
  0x65   : > { %628 = vmatprep.subr.mxu0 %v910_v0  ;;  %663 = vmatprep.subr.mxu1 %v910_v0 }
  0x66   : > { %629 = vmatpush3.msra.mxu0 %v278_v13  ;;  %664 = vmatpush3.msra.mxu1 %v372_v18 }
  0x67   : > { %630 = vmatprep.subr.mxu0 %v910_v0  ;;  %665 = vmatprep.subr.mxu1 %v910_v0 }
  0x68   : > { %631 = vmatpush3.msra.mxu0 %v277_v15  ;;  %666 = vmatpush3.msra.mxu1 %v371_v20 }
  0x69   : > { %632 = vmatprep.subr.mxu0 %v910_v0  ;;  %667 = vmatprep.subr.mxu1 %v910_v0 }
  0x6a   : > { %633 = vmatpush3.msra.mxu0 %v276_v17  ;;  %668 = vmatpush3.msra.mxu1 %v370_v22 }
  0x6b   : > { %634 = vmatprep.subr.mxu0 %v910_v0  ;;  %669 = vmatprep.subr.mxu1 %v910_v0 }
  0x6c   : > { %635 = vmatpush3.msra.mxu0 %v275_v19  ;;  %670 = vmatpush3.msra.mxu1 %v369_v24 }
  0x6d   : > { %636 = vmatprep.subr.mxu0 %v910_v0  ;;  %671 = vmatprep.subr.mxu1 %v910_v0 }
  0x6e   : > { %637 = vmatpush3.msra.mxu0 %v274_v21  ;;  %672 = vmatpush3.msra.mxu1 %v368_v26 }
  0x6f   : > { %638 = vmatprep.subr.mxu0 %v910_v0  ;;  %673 = vmatprep.subr.mxu1 %v910_v0 }
  0x70   : > { %639 = vmatpush3.msra.mxu0 %v273_v23  ;;  %674 = vmatpush3.msra.mxu1 %v367_v28 }
  0x71   : > { %640 = vmatprep.subr.mxu0 %v910_v0  ;;  %675 = vmatprep.subr.mxu1 %v910_v0 }
  0x72   : > { %641 = vmatpush3.msra.mxu0 %v272_v25  ;;  %676 = vmatpush3.msra.mxu1 %v366_v31 }
  0x73   : > { %642 = vmatprep.subr.mxu0 %v910_v0  ;;  %677 = vmatprep.subr.mxu1 %v910_v0 }
  0x74   : > { %643 = vmatpush3.msra.mxu0 %v271_v27  ;;  %678 = vmatpush3.msra.mxu1 %v365_v32 }
  0x75   : > { %644 = vmatprep.subr.mxu0 %v910_v0  ;;  %679 = vmatprep.subr.mxu1 %v910_v0 }
  0x76   : > { %645 = vmatpush3.msra.mxu0 %v270_v29  ;;  %680 = vmatpush3.msra.mxu1 %v364_v33 }
  0x77   : > { %647 = vmatmul.mubr.f32.vlgmr.msra.gmra.mxu0 %v269_v30 }
 0x137   : > { %v359_v35 = vpop.f32.mrf.mxu0 }
 0x138   : > { %v360_v36 = vadd.f32 %v574_v34, %v359_v35 }
 0x139   : > { %v648_v37 = vpop.f32.mrf.mxu0 }
 0x13a   : > { %v363_v38 = vmax.f32 %v360_v36, 0.0 }
 0x13c   : > { %682 = vmatmul.mubr.f32.vlgmr.msra.gmra.mxu1 %v363_v38 }
 0x1fc   : > { %v453_v40 = vpop.f32.mrf.mxu1 }
 0x1fd   : > { %v454_v41 = vadd.f32 %v575_v39, %v453_v40 }
 0x1fe   : > { %v683_v42 = vpop.f32.mrf.mxu1 }
 0x1ff   : > { %v457_v43 = vadd.f32 %v454_v41, %v269_v30 }
 0x201   : > { %458 = vst [vmem:[%s268_s12] sm:$0xff] %v457_v43 }
 0x202   : > { %848 = shalt.err (!%p845_p9)
}
 0x203   : > { %s849_s17 = scalar_lea.hbm %s471_s28, 128  ;;  %s853_s26 = scalar_lea.hbm %s1160_s5, 256 }
 0x204   : > { %p850_p13 = scmp.ne.s32.totalorder %s471_s28, %s849_s17  ;;  %p854_p4 = scmp.lt.s32.totalorder %s471_s28, %s1160_s5 }
 0x205   : > { %p855_p8 = scmp.lt.s32.totalorder %s853_s26, %s849_s17 }
 0x206   : > { %p851_p5 = pnand %p850_p13, %p1176_p0 }
 0x207   : > { %p856_p3 = por %p855_p8, %p854_p4 }
 0x208   : > { %p852_p10 = pneg %p851_p5 }
 0x20a   : > { %p857_p11 = pnand %p856_p3, %p852_p10 }
 0x20c   : > { %860 = shalt.err (!%p857_p11)
}
 0x20d   : > { %694 = dma.vmem_to_hbm [thread:$0]  (%p1176_p0), %s474_s30, 128, %s471_s28, %s460_s7  }
 0x20e PF: > { %s485_s11 = sand.u32 1, %s891_s18   ;;  %p1177_p1 = scmp.ne.s32.totalorder %s1166_s25, 0 }
 0x20f   : > { %p1178_p2 = scmp.ge.s32.totalorder %s903_s21, 2  ;;  %s486_s12 = scalar_lea.sflag [#allocation4], %s485_s11 }
 0x211   : > { %p708_p6 = pnand %p1178_p2, %p1177_p1 }
 0x213   : > { %p709_p12 = pneg %p708_p6 }
 0x215   : > { %886 = dma.done.wait (%p709_p12), %s486_s12, 128  }
 0x216   : > { %888 = vsyncadd (%p709_p12), %s486_s12, 4294967168  ;;  %p19_p7 = scmp.ge.s32.totalorder %s1015_s15, 4   ;;  %s1179_s18 = smov %s895_s19 }
 0x217   : > { %s1180_s19 = smov %s899_s20  ;;  %s1181_s20 = smov %s1031_s27 }
 0x218   : > { %s1182_s21 = smov %s1015_s15  ;;  %21 = sbr.rel (!%p19_p7) target bundleno = 6 (0x6), region = 93 }
 0x21d   :  { %491 = vsyncpa [#allocation3], 1 }
 0x21e   :  { %493 = vsyncpa [#allocation3 + $0x1], 1 }
 0x21f   :  { %494 = vsyncpa [#allocation6], 1 }
 0x220   :  { %495 = vsyncpa [#allocation4], 1 }
 0x221   :  { %497 = vsyncpa [#allocation4 + $0x1], 1 }

</bundles_post_ra>
